<compile_context>
chip_gen: v7x
topology: tpu7x:2x2x1
jax: 0.10.0
libtpu: 0.0.40
codegen_flags: <defaults>
</compile_context>

<pallas_src>
import functools

import jax
import jax.numpy as jnp
from jax.experimental import pallas as pl
from jax.experimental.pallas import tpu as pltpu


def _round_up(n, m):
    return ((n + m - 1) // m) * m


def _biaffine_kernel(x_ref, u_ref, yt_ref, o_ref, t_ref, *, out_size, j1p):
    """One (batch, x-tile, y-tile) grid step; all out_size channels at once.

    x_ref:  (1, TX, I1p)     x tile (bias column + zero padding pre-applied)
    u_ref:  (I1p, O*J1p)     full U, resident in VMEM (constant block index)
    yt_ref: (1, J1p, TY)     y tile, pre-transposed to feature-major
    o_ref:  (1, O, TX, TY)   output tile (out dtype, lane-dense TY stores)
    t_ref:  (TX, O*J1p)      scratch: x_tile @ U, cached across the Sy axis
    """
    # The x-side contraction depends only on (b, ix); the Sy axis is innermost
    # and marked "arbitrary", so recompute only when its index wraps to 0.
    @pl.when(pl.program_id(2) == 0)
    def _():
        t_ref[...] = jnp.dot(
            x_ref[0], u_ref[...], preferred_element_type=jnp.float32
        ).astype(t_ref.dtype)

    yt = yt_ref[0]                               # (J1p, TY)
    for o in range(out_size):                    # static unroll, small O
        t_o = t_ref[:, o * j1p:(o + 1) * j1p]    # lane-aligned (J1p % 128 == 0)
        o_ref[0, o] = jnp.dot(
            t_o, yt, preferred_element_type=jnp.float32
        ).astype(o_ref.dtype)


def _augment_and_pad(a, add_bias, seq_pad, feat_pad, dtype):
    """Optionally cat(a, ones) along features, then zero-pad to (seq_pad, feat_pad)."""
    b, s, f = a.shape
    a = a.astype(dtype)
    cols = [a]
    if add_bias:
        cols.append(jnp.ones((b, s, 1), dtype))
    f1 = f + int(add_bias)
    if feat_pad > f1:
        cols.append(jnp.zeros((b, s, feat_pad - f1), dtype))
    if len(cols) > 1:
        a = jnp.concatenate(cols, axis=-1)
    if seq_pad > s:
        a = jnp.pad(a, ((0, 0), (0, seq_pad - s), (0, 0)))
    return a


@functools.partial(
    jax.jit,
    static_argnames=("bias_x", "bias_y", "compute_dtype", "out_dtype",
                     "tile_x", "tile_y", "transpose_out", "min_pallas_flops"))
def biaffine_forward(x, y, U, bias_x=True, bias_y=True, *,
                     compute_dtype=jnp.bfloat16, out_dtype=None,
                     tile_x=512, tile_y=512, transpose_out=True,
                     min_pallas_flops=10_000_000):
    """out[b, sx, sy, o] = sum_{i,j} x_aug[b, sx, i] * U[i, o, j] * y_aug[b, sy, j].

    transpose_out=True returns the PyTorch (B, Sx, Sy, O) layout; False returns
    (B, O, Sx, Sy) and skips the extra HBM transpose pass.
    """
    assert x.ndim == 3 and y.ndim == 3 and U.ndim == 3
    assert tile_x % 16 == 0 and tile_y % 128 == 0
    if out_dtype is None:
        out_dtype = compute_dtype

    B, Sx, in_x = x.shape
    By, Sy, in_y = y.shape
    assert B == By
    I1 = in_x + int(bias_x)
    J1 = in_y + int(bias_y)
    O = U.shape[1]
    assert U.shape == (I1, O, J1), U.shape

    # Small-problem fallback: pallas dispatch + tile padding dominates tiny
    # problems on every TPU generation.
    total_flops = 2 * B * Sx * O * J1 * (I1 + Sy)
    if total_flops < min_pallas_flops:
        xa = jnp.concatenate([x, jnp.ones_like(x[..., :1])], -1) if bias_x else x
        ya = jnp.concatenate([y, jnp.ones_like(y[..., :1])], -1) if bias_y else y
        out = jnp.einsum('bxi,ioj,byj->bxyo',
                         xa.astype(compute_dtype), U.astype(compute_dtype),
                         ya.astype(compute_dtype),
                         preferred_element_type=jnp.float32).astype(out_dtype)
        if not transpose_out:
            out = jnp.transpose(out, (0, 3, 1, 2))
        return out

    # Feature (contraction) dims.  I1 only needs MXU-K alignment (16); J1 is
    # padded to a multiple of 128 so the per-channel lane slices of the
    # (TX, O*J1p) scratch and U are lane-aligned.  Zero rows/cols of U
    # contribute nothing.
    I1p = _round_up(I1, 16)
    J1p = _round_up(J1, 128)

    cbytes = jnp.dtype(compute_dtype).itemsize
    obytes = jnp.dtype(out_dtype).itemsize

    # Seq tiling.  TX: sublane alignment only; TY: output lane dim, multiple of
    # 128 for lane-dense (unmasked) stores.  Start large (review item 3) and
    # shrink to a VMEM budget that fits all of v5e/v6e (128 MiB physical) and
    # v7x (64 MiB physical, 32 MiB scoped default).
    TX = min(tile_x, _round_up(Sx, 16))
    TY = min(tile_y, _round_up(Sy, 128))

    def vmem_bytes(tx, ty):
        u = 2 * I1p * O * J1p * cbytes          # resident U (2 buffers)
        xb = 2 * tx * I1p * cbytes              # x tile, double-buffered
        yb = 2 * J1p * ty * cbytes              # yt tile, double-buffered
        ob = 2 * O * tx * ty * obytes           # output tile, double-buffered
        tb = tx * O * J1p * cbytes              # scratch (single)
        return u + xb + yb + ob + tb

    _BUDGET = 40 * 1024 * 1024
    while vmem_bytes(TX, TY) > _BUDGET and TY > 128:
        TY = max(128, _round_up(TY // 2, 128))
    while vmem_bytes(TX, TY) > _BUDGET and TX > 16:
        TX = max(16, _round_up(TX // 2, 16))
    # TODO(synk): if the resident U alone (2 * O * I1p * J1p bytes) blows the
    # budget (very large label sets / hidden sizes), stream U over an O grid
    # axis instead of keeping it resident.

    Sxp = _round_up(Sx, TX)
    Syp = _round_up(Sy, TY)

    x_p = _augment_and_pad(x, bias_x, Sxp, I1p, compute_dtype)   # (B, Sxp, I1p)
    y_p = _augment_and_pad(y, bias_y, Syp, J1p, compute_dtype)   # (B, Syp, J1p)
    # Pre-transpose y so the second matmul's RHS is already (J1p, TY) with the
    # Sy tile on the lane axis -- no in-kernel transpose.
    y_t = jnp.transpose(y_p, (0, 2, 1))                          # (B, J1p, Syp)

    # U: (I1, O, J1) -> zero-pad -> flatten to (I1p, O*J1p); column o*J1p + j
    # matches the per-channel scratch slices in the kernel.
    u_p = jnp.pad(U.astype(compute_dtype),
                  ((0, I1p - I1), (0, 0), (0, J1p - J1)))        # (I1p, O, J1p)
    u_flat = u_p.reshape(I1p, O * J1p)

    grid = (B, Sxp // TX, Syp // TY)

    # Advisory cost estimate: x-side contraction once per (b, ix), y-side once
    # per grid step; y tiles re-read once per x tile, U read once (resident).
    flops = 2 * B * Sxp * O * J1p * (I1p + Syp)
    bytes_accessed = ((x_p.size + (Sxp // TX) * y_t.size + u_flat.size) * cbytes
                      + B * O * Sxp * Syp * obytes)

    kernel = functools.partial(_biaffine_kernel, out_size=O, j1p=J1p)

    out_p = pl.pallas_call(
        kernel,
        out_shape=jax.ShapeDtypeStruct((B, O, Sxp, Syp), out_dtype),
        grid_spec=pltpu.PrefetchScalarGridSpec(
            num_scalar_prefetch=0,
            grid=grid,
            in_specs=[
                pl.BlockSpec((1, TX, I1p), lambda b, ix, iy: (b, ix, 0)),
                # Constant index -> DMA'd once, resident in VMEM.
                pl.BlockSpec((I1p, O * J1p), lambda b, ix, iy: (0, 0)),
                pl.BlockSpec((1, J1p, TY), lambda b, ix, iy: (b, 0, iy)),
            ],
            out_specs=pl.BlockSpec(
                (1, O, TX, TY), lambda b, ix, iy: (b, 0, ix, iy)),
            scratch_shapes=[pltpu.VMEM((TX, O * J1p), compute_dtype)],
        ),
        compiler_params=pltpu.CompilerParams(
            # b / x-tile are independent (shardable across v7x's 2 TensorCores);
            # the Sy axis carries the t scratch so it must stay sequential.
            dimension_semantics=("parallel", "parallel", "arbitrary"),
            # Scoped default is 16 MiB (v5e) / 32 MiB (v6e, v7x); the budget
            # above keeps usage <= ~40 MiB which also fits v7x's 64 MiB physical.
            vmem_limit_bytes=48 * 1024 * 1024,
        ),
        cost_estimate=pl.CostEstimate(
            flops=flops, transcendentals=0, bytes_accessed=bytes_accessed),
    )(x_p, u_flat, y_t)

    out = out_p[:, :, :Sx, :Sy]                  # (B, O, Sx, Sy)
    if transpose_out:
        # PyTorch einsum order.  Done on the (by default bf16) output, so the
        # extra HBM pass is half the f32 cost; pass transpose_out=False to
        # skip it entirely and consume (B, O, Sx, Sy).
        out = jnp.transpose(out, (0, 2, 3, 1))   # (B, Sx, Sy, O)
    return out


if __name__ == "__main__":
    batch, seq, in_size, out_size = 2, 8, 32, 4
    bias_x, bias_y = True, True

    key = jax.random.PRNGKey(0)
    kx, ky, ku = jax.random.split(key, 3)
    x = jax.random.normal(kx, (batch, seq, in_size), dtype=jnp.float32)
    y = jax.random.normal(ky, (batch, seq, in_size), dtype=jnp.float32)
    U = jax.random.normal(
        ku, (in_size + int(bias_x), out_size, in_size + int(bias_y)),
        dtype=jnp.float32)

    def reference(xr, yr, Ur):
        xa = jnp.concatenate([xr, jnp.ones_like(xr[..., :1])], axis=-1)
        ya = jnp.concatenate([yr, jnp.ones_like(yr[..., :1])], axis=-1)
        return jnp.einsum('bxi,ioj,byj->bxyo', xa, Ur, ya,
                          precision=jax.lax.Precision.HIGHEST)

    # 1) Exactness: f32 compute path vs f32 reference (force the Pallas path).
    out_f32 = jax.block_until_ready(
        biaffine_forward(x, y, U, bias_x=bias_x, bias_y=bias_y,
                         compute_dtype=jnp.float32, min_pallas_flops=0))
    ref_f32 = reference(x, y, U)
    assert out_f32.shape == (batch, seq, seq, out_size), out_f32.shape
    assert jnp.allclose(out_f32, ref_f32, atol=1e-3, rtol=1e-4), float(
        jnp.max(jnp.abs(out_f32 - ref_f32)))

    # 2) Default bf16-fed MXU path (f32 accumulation, bf16 output) vs a
    #    reference computed from bf16-rounded inputs.
    out_bf = jax.block_until_ready(
        biaffine_forward(x, y, U, bias_x=bias_x, bias_y=bias_y,
                         min_pallas_flops=0))
    cast = lambda a: a.astype(jnp.bfloat16).astype(jnp.float32)
    ref_bf = reference(cast(x), cast(y), cast(U))
    assert out_bf.shape == (batch, seq, seq, out_size), out_bf.shape
    assert jnp.allclose(out_bf.astype(jnp.float32), ref_bf,
                        atol=5e-1, rtol=2e-2), float(
        jnp.max(jnp.abs(out_bf.astype(jnp.float32) - ref_bf)))

    print("KERNEL_OK")
</pallas_src>

<mosaic_0001>
module attributes {stable_mosaic.version = 11 : i64} {
  func.func @_biaffine_kernel(%arg0: i32, %arg1: i32, %arg2: i32, %arg3: memref<1x16x48xf32, #tpu.memory_space<vmem>>, %arg4: memref<48x512xf32, #tpu.memory_space<vmem>>, %arg5: memref<1x128x128xf32, #tpu.memory_space<vmem>>, %arg6: memref<1x4x16x128xf32, #tpu.memory_space<vmem>>, %arg7: memref<16x512xf32, #tpu.memory_space<vmem>>) attributes {dimension_semantics = [#tpu.dimension_semantics<parallel>, #tpu.dimension_semantics<parallel>, #tpu.dimension_semantics<arbitrary>], iteration_bounds = array<i64: 2, 1, 1>, scalar_prefetch = 0 : i64, scratch_operands = 1 : i64, tpu.core_type = #tpu.core_type<tc>, window_params = [{transform_indices = @transform_0, window_bounds = array<i64: 1, 16, 48>}, {pipeline_mode = #tpu.pipeline_mode<synchronous>, transform_indices = @transform_1, window_bounds = array<i64: 48, 512>}, {transform_indices = @transform_2, window_bounds = array<i64: 1, 128, 128>}, {transform_indices = @transform_3, window_bounds = array<i64: 1, 4, 16, 128>}]} {
    %c0_i32 = arith.constant 0 : i32
    %0 = arith.cmpi eq, %arg2, %c0_i32 : i32
    %1 = arith.extui %0 : i1 to i32
    %c0_i32_0 = arith.constant 0 : i32
    %2 = arith.cmpi ne, %1, %c0_i32_0 : i32
    scf.if %2 {
      %c0_24 = arith.constant 0 : index
      %c0_25 = arith.constant 0 : index
      %c0_26 = arith.constant 0 : index
      %25 = vector.load %arg3[%c0_24, %c0_25, %c0_26] : memref<1x16x48xf32, #tpu.memory_space<vmem>>, vector<1x16x48xf32>
      %26 = vector.shape_cast %25 : vector<1x16x48xf32> to vector<16x48xf32>
      %c0_27 = arith.constant 0 : index
      %c0_28 = arith.constant 0 : index
      %27 = vector.load %arg4[%c0_27, %c0_28] : memref<48x512xf32, #tpu.memory_space<vmem>>, vector<48x512xf32>
      %cst_29 = arith.constant dense<0.000000e+00> : vector<16x512xf32>
      %28 = tpu.matmul %26, %27, %cst_29 {dimension_numbers = #tpu.dot_dimension_numbers<[1], [0], [0], [1], [0, 0, 1, 1], [], []>} : vector<16x48xf32>, vector<48x512xf32>, vector<16x512xf32> -> vector<16x512xf32>
      %c0_30 = arith.constant 0 : index
      %c0_31 = arith.constant 0 : index
      %29 = vector.load %arg7[%c0_30, %c0_31] : memref<16x512xf32, #tpu.memory_space<vmem>>, vector<16x512xf32>
      tpu.vector_store %arg7[%c0_30, %c0_31], %28 {strides = array<i32>} : memref<16x512xf32, #tpu.memory_space<vmem>>, vector<16x512xf32>,
    } else {
    }
    %c0 = arith.constant 0 : index
    %c0_1 = arith.constant 0 : index
    %c0_2 = arith.constant 0 : index
    %3 = vector.load %arg5[%c0, %c0_1, %c0_2] : memref<1x128x128xf32, #tpu.memory_space<vmem>>, vector<1x128x128xf32>
    %4 = vector.shape_cast %3 : vector<1x128x128xf32> to vector<128x128xf32>
    %c0_3 = arith.constant 0 : index
    %c0_4 = arith.constant 0 : index
    %5 = vector.load %arg7[%c0_3, %c0_4] : memref<16x512xf32, #tpu.memory_space<vmem>>, vector<16x128xf32>
    %cst = arith.constant dense<0.000000e+00> : vector<16x128xf32>
    %6 = tpu.matmul %5, %4, %cst {dimension_numbers = #tpu.dot_dimension_numbers<[1], [0], [0], [1], [0, 0, 1, 1], [], []>} : vector<16x128xf32>, vector<128x128xf32>, vector<16x128xf32> -> vector<16x128xf32>
    %c0_5 = arith.constant 0 : index
    %c0_6 = arith.constant 0 : index
    %c0_7 = arith.constant 0 : index
    %c0_8 = arith.constant 0 : index
    %7 = vector.load %arg6[%c0_5, %c0_6, %c0_7, %c0_8] : memref<1x4x16x128xf32, #tpu.memory_space<vmem>>, vector<1x1x16x128xf32>
    %8 = vector.shape_cast %7 : vector<1x1x16x128xf32> to vector<16x128xf32>
    %9 = vector.shape_cast %6 : vector<16x128xf32> to vector<1x1x16x128xf32>
    tpu.vector_store %arg6[%c0_5, %c0_6, %c0_7, %c0_8], %9 {strides = array<i32>} : memref<1x4x16x128xf32, #tpu.memory_space<vmem>>, vector<1x1x16x128xf32>,
    %c0_9 = arith.constant 0 : index
    %c128 = arith.constant 128 : index
    %10 = vector.load %arg7[%c0_9, %c128] : memref<16x512xf32, #tpu.memory_space<vmem>>, vector<16x128xf32>
    %cst_10 = arith.constant dense<0.000000e+00> : vector<16x128xf32>
    %11 = tpu.matmul %10, %4, %cst_10 {dimension_numbers = #tpu.dot_dimension_numbers<[1], [0], [0], [1], [0, 0, 1, 1], [], []>} : vector<16x128xf32>, vector<128x128xf32>, vector<16x128xf32> -> vector<16x128xf32>
    %c0_11 = arith.constant 0 : index
    %c1 = arith.constant 1 : index
    %c0_12 = arith.constant 0 : index
    %c0_13 = arith.constant 0 : index
    %12 = vector.load %arg6[%c0_11, %c1, %c0_12, %c0_13] : memref<1x4x16x128xf32, #tpu.memory_space<vmem>>, vector<1x1x16x128xf32>
    %13 = vector.shape_cast %12 : vector<1x1x16x128xf32> to vector<16x128xf32>
    %14 = vector.shape_cast %11 : vector<16x128xf32> to vector<1x1x16x128xf32>
    tpu.vector_store %arg6[%c0_11, %c1, %c0_12, %c0_13], %14 {strides = array<i32>} : memref<1x4x16x128xf32, #tpu.memory_space<vmem>>, vector<1x1x16x128xf32>,
    %c0_14 = arith.constant 0 : index
    %c256 = arith.constant 256 : index
    %15 = vector.load %arg7[%c0_14, %c256] : memref<16x512xf32, #tpu.memory_space<vmem>>, vector<16x128xf32>
    %cst_15 = arith.constant dense<0.000000e+00> : vector<16x128xf32>
    %16 = tpu.matmul %15, %4, %cst_15 {dimension_numbers = #tpu.dot_dimension_numbers<[1], [0], [0], [1], [0, 0, 1, 1], [], []>} : vector<16x128xf32>, vector<128x128xf32>, vector<16x128xf32> -> vector<16x128xf32>
    %c0_16 = arith.constant 0 : index
    %c2 = arith.constant 2 : index
    %c0_17 = arith.constant 0 : index
    %c0_18 = arith.constant 0 : index
    %17 = vector.load %arg6[%c0_16, %c2, %c0_17, %c0_18] : memref<1x4x16x128xf32, #tpu.memory_space<vmem>>, vector<1x1x16x128xf32>
    %18 = vector.shape_cast %17 : vector<1x1x16x128xf32> to vector<16x128xf32>
    %19 = vector.shape_cast %16 : vector<16x128xf32> to vector<1x1x16x128xf32>
    tpu.vector_store %arg6[%c0_16, %c2, %c0_17, %c0_18], %19 {strides = array<i32>} : memref<1x4x16x128xf32, #tpu.memory_space<vmem>>, vector<1x1x16x128xf32>,
    %c0_19 = arith.constant 0 : index
    %c384 = arith.constant 384 : index
    %20 = vector.load %arg7[%c0_19, %c384] : memref<16x512xf32, #tpu.memory_space<vmem>>, vector<16x128xf32>
    %cst_20 = arith.constant dense<0.000000e+00> : vector<16x128xf32>
    %21 = tpu.matmul %20, %4, %cst_20 {dimension_numbers = #tpu.dot_dimension_numbers<[1], [0], [0], [1], [0, 0, 1, 1], [], []>} : vector<16x128xf32>, vector<128x128xf32>, vector<16x128xf32> -> vector<16x128xf32>
    %c0_21 = arith.constant 0 : index
    %c3 = arith.constant 3 : index
    %c0_22 = arith.constant 0 : index
    %c0_23 = arith.constant 0 : index
    %22 = vector.load %arg6[%c0_21, %c3, %c0_22, %c0_23] : memref<1x4x16x128xf32, #tpu.memory_space<vmem>>, vector<1x1x16x128xf32>
    %23 = vector.shape_cast %22 : vector<1x1x16x128xf32> to vector<16x128xf32>
    %24 = vector.shape_cast %21 : vector<16x128xf32> to vector<1x1x16x128xf32>
    tpu.vector_store %arg6[%c0_21, %c3, %c0_22, %c0_23], %24 {strides = array<i32>} : memref<1x4x16x128xf32, #tpu.memory_space<vmem>>, vector<1x1x16x128xf32>,
    return
  }
  func.func @transform_0(%arg0: i32, %arg1: i32, %arg2: i32) -> (i32, i32, i32) {
    %c0_i32 = arith.constant 0 : i32
    %c0_i32_0 = arith.constant 0 : i32
    return %arg0, %arg1, %c0_i32 : i32, i32, i32
  }
  func.func @transform_1(%arg0: i32, %arg1: i32, %arg2: i32) -> (i32, i32) {
    %c0_i32 = arith.constant 0 : i32
    %c0_i32_0 = arith.constant 0 : i32
    %c0_i32_1 = arith.constant 0 : i32
    return %c0_i32, %c0_i32_0 : i32, i32
  }
  func.func @transform_2(%arg0: i32, %arg1: i32, %arg2: i32) -> (i32, i32, i32) {
    %c0_i32 = arith.constant 0 : i32
    %c0_i32_0 = arith.constant 0 : i32
    return %arg0, %c0_i32, %arg2 : i32, i32, i32
  }
  func.func @transform_3(%arg0: i32, %arg1: i32, %arg2: i32) -> (i32, i32, i32, i32) {
    %c0_i32 = arith.constant 0 : i32
    %c0_i32_0 = arith.constant 0 : i32
    return %arg0, %c0_i32, %arg1, %arg2 : i32, i32, i32, i32
  }
}

</mosaic_0001>

<bundles_post_ra>
// kernel: biaffine_forward.1
= control target key start
LH: loop header
LB: loop body
LE: loop exit
PB: predicated region body
PF: predicated region fallthrough
CT: control target
= control target key end

     0   :  { %s1368_s12 = smov 0   ;;  %s1370_s13 = smov 0   ;;  %s1547_s0 = inlined_call_operand.vmem [shape: f32[2,16,48], index: 0, kind: input, shape index: {}]   ;;  %s1548_s1 = inlined_call_operand.vmem [shape: f32[48,512], index: 1, kind: input, shape index: {}]   ;;  %s1549_s2 = inlined_call_operand.vmem [shape: f32[2,128,128], index: 2, kind: input, shape index: {}]   ;;  %s1550_s3 = inlined_call_operand.vmem [shape: f32[2,4,16,128], index: 3, kind: output, shape index: {}]  }
   0x1   :  { %s1372_s14 = smov 0  }
   0x2 LB: > { %s32_s15 = sadd.s32 1, %s1341_s13  ;;  %p912_p0 = scmp.ge.s32.totalorder %s1345_s14, 1  ;;  %s1345_s14 = sphi %s1372_s14, %s13_s14   ;;  %s1341_s13 = sphi %s1370_s13, %s1552_s13   ;;  %s1337_s12 = sphi %s1368_s12, %s1551_s12  }
   0x3   : > { %p34_p1 = scmp.ge.s32.totalorder %s32_s15, 2  ;;  %p182_p2 = scmp.lt.s32.totalorder %s1345_s14, 3 }
   0x5   : > { %s1554_s15 = smov (%p34_p1, %s32_s15), 0  ;;  %p183_p3 = pnand %p912_p0, %p182_p2 }
   0x6   : > { %v263_v0 = vld [vmem:[%s1548_s1 + $0x8] sm:$0xff] (!%p183_p3)  ;;  %v262_v2 = vld [vmem:[%s1548_s1] sm:$0xff] (!%p183_p3)  ;;  %p226_p4 = scmp.lt.s32.totalorder (!%p183_p3), %s1337_s12, 1  ;;  %v1347_v7 = vmov (!%p183_p3), 0.0   ;;  %v265_v17 = vld [vmem:[%s1548_s1 + $0x18] sm:$0xff] (!%p183_p3)  ;;  %vm286_vm0 = vcmask (!%p183_p3), 392192  }
   0x7   : > { %186 = sbr.rel (%p183_p3) target bundleno = 485 (0x1e5), region = 32  ;;  %v267_v1 = vld [vmem:[%s1548_s1 + $0x28] sm:$0xff] (!%p183_p3)  ;;  %v266_v4 = vld [vmem:[%s1548_s1 + $0x20] sm:$0xff] (!%p183_p3)  ;;  %357 = vmatprep.mubr.f32.mxu0 (!%p183_p3), %v1347_v7  ;;  %434 = vmatprep.mubr.f32.mxu1 (!%p183_p3), %v1347_v7  ;;  %v269_v18 = vld [vmem:[%s1548_s1 + $0x38] sm:$0xff] (!%p183_p3) }
   0x8   : > { %v1146_v3 = vpack.c.bf16 (!%p183_p3), %v267_v1, %v263_v0  ;;  %v271_v5 = vld [vmem:[%s1548_s1 + $0x48] sm:$0xff] (!%p183_p3)  ;;  %v1148_v8 = vpack.c.bf16 (!%p183_p3), %v266_v4, %v262_v2  ;;  %v270_v10 = vld [vmem:[%s1548_s1 + $0x40] sm:$0xff] (!%p183_p3)  ;;  %v264_v19 = vld [vmem:[%s1548_s1 + $0x10] sm:$0xff] (!%p183_p3)  ;;  %v1158_v21 = vpack.c.bf16 (!%p183_p3), %v269_v18, %v265_v17 }
   0x9   : > { %v275_v6 = vld [vmem:[%s1548_s1 + $0x68] sm:$0xff] (!%p183_p3)  ;;  %v274_v11 = vld [vmem:[%s1548_s1 + $0x60] sm:$0xff] (!%p183_p3)  ;;  %v268_v22 = vld [vmem:[%s1548_s1 + $0x30] sm:$0xff] (!%p183_p3) }
   0xa   : > { %v1150_v9 = vpack.c.bf16 (!%p183_p3), %v275_v6, %v271_v5  ;;  %v279_v12 = vld [vmem:[%s1548_s1 + $0x88] sm:$0xff] (!%p183_p3)  ;;  %1147 = vmatprep.subr.bf16.mxu0 (!%p183_p3), %v1146_v3  ;;  %v278_v14 = vld [vmem:[%s1548_s1 + $0x80] sm:$0xff] (!%p183_p3)  ;;  %v1152_v16 = vpack.c.bf16 (!%p183_p3), %v274_v11, %v270_v10  ;;  %v273_v23 = vld [vmem:[%s1548_s1 + $0x58] sm:$0xff] (!%p183_p3)  ;;  %v1160_v25 = vpack.c.bf16 (!%p183_p3), %v268_v22, %v264_v19  ;;  %1159 = vmatprep.subr.bf16.mxu1 (!%p183_p3), %v1158_v21 }
   0xb   : > { %v283_v13 = vld [vmem:[%s1548_s1 + $0xa8] sm:$0xff] (!%p183_p3)  ;;  %v282_v15 = vld [vmem:[%s1548_s1 + $0xa0] sm:$0xff] (!%p183_p3)  ;;  %1149 = vmatpush1.bf16.msra.mxu0 (!%p183_p3), %v1148_v8  ;;  %v277_v24 = vld [vmem:[%s1548_s1 + $0x78] sm:$0xff] (!%p183_p3) }
   0xc   : > { %1151 = vmatprep.subr.bf16.mxu0 (!%p183_p3), %v1150_v9  ;;  %v1154_v20 = vpack.c.bf16 (!%p183_p3), %v283_v13, %v279_v12  ;;  %v1162_v26 = vpack.c.bf16 (!%p183_p3), %v277_v24, %v273_v23  ;;  %v272_v27 = vld [vmem:[%s1548_s1 + $0x50] sm:$0xff] (!%p183_p3)  ;;  %v281_v29 = vld [vmem:[%s1548_s1 + $0x98] sm:$0xff] (!%p183_p3)  ;;  %v1156_v31 = vpack.c.bf16 (!%p183_p3), %v282_v15, %v278_v14  ;;  %1161 = vmatpush1.bf16.msra.mxu1 (!%p183_p3), %v1160_v25 }
   0xd   : > { %v276_v28 = vld [vmem:[%s1548_s1 + $0x70] sm:$0xff] (!%p183_p3)  ;;  %v285_v30 = vld [vmem:[%s1548_s1 + $0xb8] sm:$0xff] (!%p183_p3) }
   0xe   : > { %s1556_s12 = smov (!%p226_p4, %s1337_s12), 1  ;;  %v1164_v32 = vpack.c.bf16 %v276_v28, %v272_v27  ;;  %1163 = vmatprep.subr.bf16.mxu1 %v1162_v26  ;;  %v1166_v34 = vpack.c.bf16 %v285_v30, %v281_v29  ;;  %v280_v35 = vld [vmem:[%s1548_s1 + $0x90] sm:$0xff] }
   0xf   : > { %s932_s17 = sshll.u32 %s1556_s12, 7  ;;  %s931_s6 = sshll.u32 %s1556_s12, 4  ;;  %1153 = vmatpush1.bf16.msra.mxu0 %v1152_v16  ;;  %v284_v36 = vld [vmem:[%s1548_s1 + $0xb0] sm:$0xff] }
  0x10   : > { %s1439_s26 = scalar_lea.vmem %s1549_s2, %s932_s17  ;;  %1155 = vmatprep.subr.bf16.mxu0 %v1154_v20  ;;  %s233_s21 = scalar_lea.vmem %s1547_s0, %s931_s6  ;;  %1165 = vmatpush1.bf16.msra.mxu1 %v1164_v32  ;;  %v1168_v42 = vpack.c.bf16 %v284_v36, %v280_v35 }
  0x11   : > { %v455_v33 = vld [vmem:[%s1439_s26] sm:$0xff]  ;;  %v456_v37 = vld [vmem:[%s1439_s26 + $0x8] sm:$0xff]  ;;  %v457_v39 = vld [vmem:[%s1439_s26 + $0x10] sm:$0xff]  ;;  %1167 = vmatprep.subr.bf16.mxu1 %v1166_v34 }
  0x12   : > { %v1474_v38 = vpack.c.bf16 %v456_v37, %v455_v33  ;;  %v458_v40 = vld [vmem:[%s1439_s26 + $0x18] sm:$0xff]  ;;  %v260_v41 = vld [vmem:[%s233_s21] sm:$0xff]  ;;  %v460_v45 = vld [vmem:[%s1439_s26 + $0x28] sm:$0xff] }
  0x13   : > { %1157 = vmatpush1.bf16.msra.mxu0 %v1156_v31  ;;  %v1479_v43 = vpack.c.bf16 %v458_v40, %v457_v39  ;;  %v459_v44 = vld [vmem:[%s1439_s26 + $0x20] sm:$0xff]  ;;  %v261_v46 = vld [vmem:[%s233_s21 + $0x8] sm:$0xff]  ;;  %v461_v48 = vld [vmem:[%s1439_s26 + $0x30] sm:$0xff] }
  0x14   : > { %1171 = vmatprep.subr.bf16.mxu0 %v1474_v38  ;;  %1169 = vmatpush1.bf16.msra.mxu1 %v1168_v42  ;;  %v1488_v47 = vpack.c.bf16 %v460_v45, %v459_v44  ;;  %v462_v49 = vld [vmem:[%s1439_s26 + $0x38] sm:$0xff]  ;;  %v463_v51 = vld [vmem:[%s1439_s26 + $0x40] sm:$0xff]  ;;  %v464_v52 = vld [vmem:[%s1439_s26 + $0x48] sm:$0xff] }
  0x15   : > { %1203 = vmatprep.subr.bf16.mxu1 %v1474_v38  ;;  %v1499_v50 = vpack.c.bf16 %v462_v49, %v461_v48  ;;  %v1186_v53 = vpack.c.bf16 %v464_v52, %v463_v51  ;;  %v465_v54 = vld [vmem:[%s1439_s26 + $0x50] sm:$0xff]  ;;  %v466_v55 = vld [vmem:[%s1439_s26 + $0x58] sm:$0xff]  ;;  %v467_v57 = vld [vmem:[%s1439_s26 + $0x60] sm:$0xff] }
  0x16   : > { %919 = vmatmul.mubr.msk.f32.vlgmr.msra.gmra.mrb[0].mxu0 %vm286_vm0, %v260_v41  ;;  %v1190_v56 = vpack.c.bf16 %v466_v55, %v465_v54  ;;  %v468_v58 = vld [vmem:[%s1439_s26 + $0x68] sm:$0xff]  ;;  %v469_v60 = vld [vmem:[%s1439_s26 + $0x70] sm:$0xff]  ;;  %v470_v61 = vld [vmem:[%s1439_s26 + $0x78] sm:$0xff]  ;;  %s933_s26 = sshll.u32 %s1556_s12, 6 }
  0x17   : > { %363 = vmatprep.mubr.f32.mxu0 %v1347_v7  ;;  %1173 = vmatpush3.bf16.msra.mxu0 %v1474_v38  ;;  %v1194_v59 = vpack.c.bf16 %v468_v58, %v467_v57  ;;  %v1198_v62 = vpack.c.bf16 %v470_v61, %v469_v60  ;;  %s254_s29 = scalar_lea.vmem %s1550_s3, %s933_s26 }
  0x18   : > { %1175 = vmatprep.subr.bf16.mxu0 %v1479_v43  ;;  %921 = vmatmul.mubr.msk.f32.vlgmr.msra.gmra.mrb[0].mxu1 %vm286_vm0, %v260_v41 }
  0x19   : > { %440 = vmatprep.mubr.f32.mxu1 %v1347_v7  ;;  %1205 = vmatpush3.bf16.msra.mxu1 %v1474_v38 }
  0x1a   : > { %920 = vmatmul.mubr.msk.f32.gmra.mrb[2].mxu0 %vm286_vm0, %v261_v46  ;;  %1207 = vmatprep.subr.bf16.mxu1 %v1479_v43 }
  0x1b   : > { %1177 = vmatpush3.bf16.msra.mxu0 %v1479_v43 }
  0x1c   : > { %1179 = vmatprep.subr.bf16.mxu0 %v1488_v47  ;;  %922 = vmatmul.mubr.msk.f32.gmra.mrb[2].mxu1 %vm286_vm0, %v261_v46 }
  0x1d   : > { %1209 = vmatpush3.bf16.msra.mxu1 %v1479_v43 }
  0x1e   : > { %1211 = vmatprep.subr.bf16.mxu1 %v1488_v47 }
  0x1f   : > { %1181 = vmatpush3.bf16.msra.mxu0 %v1488_v47 }
  0x20   : > { %1183 = vmatprep.subr.bf16.mxu0 %v1499_v50 }
  0x21   : > { %1213 = vmatpush3.bf16.msra.mxu1 %v1488_v47 }
  0x22   : > { %1215 = vmatprep.subr.bf16.mxu1 %v1499_v50 }
  0x23   : > { %1185 = vmatpush3.bf16.msra.mxu0 %v1499_v50 }
  0x24   : > { %1187 = vmatprep.subr.bf16.mxu0 %v1186_v53 }
  0x25   : > { %1217 = vmatpush3.bf16.msra.mxu1 %v1499_v50 }
  0x26   : > { %1219 = vmatprep.subr.bf16.mxu1 %v1186_v53 }
  0x27   : > { %1189 = vmatpush3.bf16.msra.mxu0 %v1186_v53 }
  0x28   : > { %1191 = vmatprep.subr.bf16.mxu0 %v1190_v56 }
  0x29   : > { %1221 = vmatpush3.bf16.msra.mxu1 %v1186_v53 }
  0x2a   : > { %1223 = vmatprep.subr.bf16.mxu1 %v1190_v56 }
  0x2b   : > { %1193 = vmatpush3.bf16.msra.mxu0 %v1190_v56 }
  0x2c   : > { %1195 = vmatprep.subr.bf16.mxu0 %v1194_v59 }
  0x2d   : > { %1225 = vmatpush3.bf16.msra.mxu1 %v1190_v56 }
  0x2e   : > { %1227 = vmatprep.subr.bf16.mxu1 %v1194_v59 }
  0x2f   : > { %1197 = vmatpush3.bf16.msra.mxu0 %v1194_v59 }
  0x30   : > { %1199 = vmatprep.subr.bf16.mxu0 %v1198_v62 }
  0x31   : > { %1229 = vmatpush3.bf16.msra.mxu1 %v1194_v59 }
  0x32   : > { %1231 = vmatprep.subr.bf16.mxu1 %v1198_v62 }
  0x33   : > { %1201 = vmatpush3.bf16.msra.mxu0 %v1198_v62 }
  0x34   : > { %1235 = vmatprep.subr.bf16.mxu0 %v1474_v38 }
  0x35   : > { %1233 = vmatpush3.bf16.msra.mxu1 %v1198_v62 }
  0x36   : > { %1267 = vmatprep.subr.bf16.mxu1 %v1474_v38 }
  0xe9   : > { %v359_v63 = vpop.f32.mrb[0].mxu0 }
  0xea   : > { %v361_v0 = vpop.f32.mrb[1].mxu0  ;;  %1038 = vmatprep.mubr.f32.mxu0 %v359_v63 }
  0xeb   : > { %1073 = vmatprep.mubr.f32.mxu1 %v361_v0  ;;  %v436_v2 = vpop.f32.mrb[0].mxu1 }
  0xec   : > { %v438_v4 = vpop.f32.mrb[1].mxu1 }
  0xed   : > { %v365_v1 = vpop.f32.mrb[2].mxu0 }
  0xee   : > { %v367_v3 = vpop.f32.mrb[3].mxu0  ;;  %1039 = vmatmul.mubr.f32.vlgmr.msra.gmra.mrb[4].mxu0 %v365_v1 }
  0xef   : > { %1237 = vmatpush3.bf16.msra.mxu0 %v1474_v38  ;;  %1074 = vmatmul.mubr.f32.vlgmr.msra.gmra.mrb[4].mxu1 %v367_v3  ;;  %v442_v5 = vpop.f32.mrb[2].mxu1 }
  0xf0   : > { %1269 = vmatpush3.bf16.msra.mxu1 %v1474_v38  ;;  %1239 = vmatprep.subr.bf16.mxu0 %v1479_v43  ;;  %v444_v6 = vpop.f32.mrb[3].mxu1 }
  0xf1   : > { %1271 = vmatprep.subr.bf16.mxu1 %v1479_v43  ;;  %1108 = vmatprep.mubr.f32.mxu0 %v436_v2 }
  0xf2   : > { %1143 = vmatprep.mubr.f32.mxu1 %v438_v4 }
  0xf3   : > { %1241 = vmatpush3.bf16.msra.mxu0 %v1479_v43 }
  0xf4   : > { %1273 = vmatpush3.bf16.msra.mxu1 %v1479_v43  ;;  %1243 = vmatprep.subr.bf16.mxu0 %v1488_v47 }
  0xf5   : > { %1275 = vmatprep.subr.bf16.mxu1 %v1488_v47 }
  0xf7   : > { %1245 = vmatpush3.bf16.msra.mxu0 %v1488_v47 }
  0xf8   : > { %1277 = vmatpush3.bf16.msra.mxu1 %v1488_v47  ;;  %1247 = vmatprep.subr.bf16.mxu0 %v1499_v50 }
  0xf9   : > { %1279 = vmatprep.subr.bf16.mxu1 %v1499_v50 }
  0xfb   : > { %1249 = vmatpush3.bf16.msra.mxu0 %v1499_v50 }
  0xfc   : > { %1281 = vmatpush3.bf16.msra.mxu1 %v1499_v50  ;;  %1251 = vmatprep.subr.bf16.mxu0 %v1186_v53 }
  0xfd   : > { %1283 = vmatprep.subr.bf16.mxu1 %v1186_v53 }
  0xff   : > { %1253 = vmatpush3.bf16.msra.mxu0 %v1186_v53 }
 0x100   : > { %1285 = vmatpush3.bf16.msra.mxu1 %v1186_v53  ;;  %1255 = vmatprep.subr.bf16.mxu0 %v1190_v56 }
 0x101   : > { %1287 = vmatprep.subr.bf16.mxu1 %v1190_v56 }
 0x103   : > { %1257 = vmatpush3.bf16.msra.mxu0 %v1190_v56 }
 0x104   : > { %1289 = vmatpush3.bf16.msra.mxu1 %v1190_v56  ;;  %1259 = vmatprep.subr.bf16.mxu0 %v1194_v59 }
 0x105   : > { %1291 = vmatprep.subr.bf16.mxu1 %v1194_v59 }
 0x107   : > { %1261 = vmatpush3.bf16.msra.mxu0 %v1194_v59 }
 0x108   : > { %1293 = vmatpush3.bf16.msra.mxu1 %v1194_v59  ;;  %1263 = vmatprep.subr.bf16.mxu0 %v1198_v62 }
 0x109   : > { %1295 = vmatprep.subr.bf16.mxu1 %v1198_v62 }
 0x10b   : > { %1265 = vmatpush3.bf16.msra.mxu0 %v1198_v62 }
 0x10c   : > { %1297 = vmatpush3.bf16.msra.mxu1 %v1198_v62 }
 0x10e   : > { %1109 = vmatmul.mubr.f32.vlgmr.msra.gmra.mrb[6].mxu0 %v442_v5 }
 0x10f   : > { %1144 = vmatmul.mubr.f32.vlgmr.msra.gmra.mrb[6].mxu1 %v444_v6 }
 0x1c1   : > { %v1040_v7 = vpop.f32.mrb[4].mxu0 }
 0x1c2   : > { %549 = vst [vmem:[%s254_s29 + $0x8] sm:$0xff] %v1040_v7  ;;  %v539_v8 = vpop.f32.mrb[5].mxu0  ;;  %v1075_v9 = vpop.f32.mrb[4].mxu1 }
 0x1c3   : > { %548 = vst [vmem:[%s254_s29] sm:$0xff] %v539_v8  ;;  %924 = vst [vmem:[%s254_s29 + $0x18] sm:$0xff] %v1075_v9  ;;  %v618_v10 = vpop.f32.mrb[5].mxu1 }
 0x1c4   : > { %923 = vst [vmem:[%s254_s29 + $0x10] sm:$0xff] %v618_v10 }
 0x1e1   : > { %v1110_v11 = vpop.f32.mrb[6].mxu0 }
 0x1e2   : > { %926 = vst [vmem:[%s254_s29 + $0x28] sm:$0xff] %v1110_v11  ;;  %v698_v12 = vpop.f32.mrb[7].mxu0  ;;  %v1145_v13 = vpop.f32.mrb[6].mxu1 }
 0x1e3   : > { %925 = vst [vmem:[%s254_s29 + $0x20] sm:$0xff] %v698_v12  ;;  %928 = vst [vmem:[%s254_s29 + $0x38] sm:$0xff] %v1145_v13  ;;  %v778_v14 = vpop.f32.mrb[7].mxu1 }
 0x1e4   : > { %927 = vst [vmem:[%s254_s29 + $0x30] sm:$0xff] %v778_v14 }
 0x1e5 PF: > { %s13_s14 = sadd.s32 1, %s1345_s14   ;;  %s1551_s12 = smov %s1341_s13 }
 0x1e6   : > { %p10_p5 = scmp.ge.s32.totalorder %s13_s14, 4   ;;  %s1552_s13 = smov %s1554_s15 }
 0x1e8   :  { %12 = sbr.rel (!%p10_p5) target bundleno = 2 (0x2), region = 72 }

</bundles_post_ra>
